<compile_context>
chip_gen: v6e
topology: v6e:2x2x1
jax: 0.10.0
libtpu: 0.0.40
codegen_flags: <defaults>
</compile_context>

<pallas_src>
import jax
import jax.numpy as jnp
from jax.experimental import pallas as pl
from jax.experimental.pallas import tpu as pltpu

_LANE = 128


def _identity_kernel(x_ref, o_ref):
    # Pure pass-through of the current VMEM tile.
    o_ref[...] = x_ref[...]


def _copy_2d(x2, tile_r):
    rows, cols = x2.shape
    grid = (pl.cdiv(rows, tile_r),)
    return pl.pallas_call(
        _identity_kernel,
        out_shape=jax.ShapeDtypeStruct((rows, cols), x2.dtype),
        grid_spec=pltpu.PrefetchScalarGridSpec(
            num_scalar_prefetch=0,
            grid=grid,
            in_specs=[pl.BlockSpec((tile_r, cols), lambda i: (i, 0))],
            out_specs=pl.BlockSpec((tile_r, cols), lambda i: (i, 0)),
        ),
        compiler_params=pltpu.CompilerParams(
            dimension_semantics=("parallel",),
            vmem_limit_bytes=32 * 1024 * 1024,
        ),
    )(x2)


def identity(x, materialize=True):
    """Identity forward: returns an array equal to x (same shape, same dtype).

    materialize=False returns x directly (the true nn.Identity semantics, zero
    HBM traffic). materialize=True produces a fresh copy via the Pallas kernel.
    """
    if not materialize:
        return x

    orig_shape = x.shape
    dtype = x.dtype
    itemsize = jnp.dtype(dtype).itemsize
    # Sublane packing: 8 rows for 4-byte dtypes, 16 for 2-byte, 32 for 1-byte.
    pack = max(8, 32 // itemsize)

    total = x.size
    if total == 0:
        return x  # nothing to copy

    flat = x.reshape(-1)

    # Pick a lane-dense column width (multiple of 128) that divides the element
    # count; otherwise pad up to a multiple of 128 and slice afterwards.
    cols = None
    for cand in (2048, 1024, 512, 256, 128):
        if total % cand == 0:
            cols = cand
            break
    if cols is None:
        cols = _LANE
        padded_total = pl.cdiv(total, cols) * cols
        flat = jnp.pad(flat, (0, padded_total - total))
    padded_total = flat.shape[0]
    rows = padded_total // cols

    x2 = flat.reshape(rows, cols)

    # ~2 MiB input tiles; either tile_r is a multiple of `pack` (< rows) or it
    # equals the full row extent, satisfying the (8,128) BlockSpec rule.
    target_tile_bytes = 2 * 1024 * 1024
    tile_r = max(pack, (target_tile_bytes // (cols * itemsize)) // pack * pack)
    tile_r = min(tile_r, rows)

    out2 = _copy_2d(x2, tile_r)

    out_flat = out2.reshape(-1)
    if out_flat.shape[0] != total:
        out_flat = out_flat[:total]
    return out_flat.reshape(orig_shape)


if __name__ == "__main__":
    key = jax.random.PRNGKey(0)

    # Primary: small NCHW-style input consistent with typical use of Identity.
    x = jax.random.normal(key, (2, 4, 16, 16), dtype=jnp.float32)
    y = identity(x)
    jax.block_until_ready(y)
    assert y.shape == x.shape
    assert y.dtype == x.dtype
    assert bool(jnp.all(y == x))

    # Exercise the pad-to-lane fallback (total elements not a multiple of 128).
    x_odd = jax.random.normal(jax.random.PRNGKey(1), (3, 5, 7), dtype=jnp.float32)
    y_odd = identity(x_odd)
    jax.block_until_ready(y_odd)
    assert y_odd.shape == x_odd.shape
    assert bool(jnp.all(y_odd == x_odd))

    # Exercise a sub-32-bit dtype (16-sublane packing path).
    x_bf16 = x.astype(jnp.bfloat16)
    y_bf16 = identity(x_bf16)
    jax.block_until_ready(y_bf16)
    assert y_bf16.dtype == jnp.bfloat16
    assert bool(jnp.all(y_bf16 == x_bf16))

    # Zero-traffic path (true Identity semantics).
    assert identity(x, materialize=False) is x

    print("KERNEL_OK")
</pallas_src>

<mosaic_0001>
module attributes {stable_mosaic.version = 11 : i64} {
  func.func @_identity_kernel(%arg0: i32, %arg1: memref<1x2048xf32, #tpu.memory_space<vmem>>, %arg2: memref<1x2048xf32, #tpu.memory_space<vmem>>) attributes {dimension_semantics = [#tpu.dimension_semantics<parallel>], iteration_bounds = array<i64: 1>, scalar_prefetch = 0 : i64, scratch_operands = 0 : i64, tpu.core_type = #tpu.core_type<tc>, window_params = [{transform_indices = @transform_0, window_bounds = array<i64: 1, 2048>}, {transform_indices = @transform_1, window_bounds = array<i64: 1, 2048>}]} {
    %c0 = arith.constant 0 : index
    %c0_0 = arith.constant 0 : index
    %0 = vector.load %arg1[%c0, %c0_0] : memref<1x2048xf32, #tpu.memory_space<vmem>>, vector<1x2048xf32>
    %c0_1 = arith.constant 0 : index
    %c0_2 = arith.constant 0 : index
    %1 = vector.load %arg2[%c0_1, %c0_2] : memref<1x2048xf32, #tpu.memory_space<vmem>>, vector<1x2048xf32>
    tpu.vector_store %arg2[%c0_1, %c0_2], %0 {strides = array<i32>} : memref<1x2048xf32, #tpu.memory_space<vmem>>, vector<1x2048xf32>,
    return
  }
  func.func @transform_0(%arg0: i32) -> (i32, i32) {
    %c0_i32 = arith.constant 0 : i32
    %c0_i32_0 = arith.constant 0 : i32
    return %arg0, %c0_i32 : i32, i32
  }
  func.func @transform_1(%arg0: i32) -> (i32, i32) {
    %c0_i32 = arith.constant 0 : i32
    %c0_i32_0 = arith.constant 0 : i32
    return %arg0, %c0_i32 : i32, i32
  }
}

</mosaic_0001>

<bundles_post_ra>
// kernel: tpu_custom_call.1
= control target key start
LH: loop header
LB: loop body
LE: loop exit
PB: predicated region body
PF: predicated region fallthrough
CT: control target
= control target key end

     0   :  { %6 = vsyncpa [#allocation3], 0  ;;  %s104_s0 = inlined_call_operand.hbm [shape: f32[1,2048], index: 0, kind: input, shape index: {}]   ;;  %s105_s1 = inlined_call_operand.hbm [shape: f32[1,2048], index: 1, kind: output, shape index: {}]  }
   0x1   :  { %7 = vsyncpa [#allocation4], 0  ;;  %s86_s6 = smov [#allocation2]  }
   0x2   :  { %s14_s7 = sshll.u32 %s86_s6, 4  ;;  %s15_s7 = int_to_ptr.vmem [resolvable:$true] %s14_s7 }
   0x3   :  { %s50_s8 = scalar_lea.vmem %s15_s7, 256  ;;  %p55_p1 = scmp.lt.s32.totalorder %s15_s7, %s15_s7 }
   0x4   :  { %p51_p0 = scmp.ne.s32.totalorder %s15_s7, %s50_s8  ;;  %p56_p2 = scmp.lt.s32.totalorder %s50_s8, %s50_s8 }
   0x6   :  { %p57_p3 = por %p56_p2, %p55_p1 }
   0x8   :  { %p58_p4 = pnand %p57_p3, %p51_p0 }
   0xa   :  { %61 = shalt.err (!%p58_p4)
}
   0xb   :  { %17 = dma.hbm_to_vmem [thread:$0]  %s104_s0, 256, %s15_s7, [#allocation3]  }
   0xc   :  { %82 = dma.done.wait [#allocation3], 256  }
   0xd   :  { %83 = vsyncadd [#allocation3], 4294967040  ;;  %s87_s11 = smov [#allocation5]   ;;  %v21_v0 = vld [vmem:[#allocation2] sm:$0xff]  ;;  %v22_v1 = vld [vmem:[#allocation2 + $0x8] sm:$0xff] }
   0xe   :  { %s31_s12 = sshll.u32 %s87_s11, 4  ;;  %23 = vst [vmem:[#allocation5] sm:$0xff] %v21_v0  ;;  %24 = vst [vmem:[#allocation5 + $0x8] sm:$0xff] %v22_v1  ;;  %s32_s12 = int_to_ptr.vmem [resolvable:$true] %s31_s12 }
   0xf   :  { %s62_s13 = scalar_lea.vmem %s32_s12, 256  ;;  %p67_p6 = scmp.lt.s32.totalorder %s32_s12, %s32_s12 }
  0x10   :  { %p63_p5 = scmp.ne.s32.totalorder %s32_s12, %s62_s13  ;;  %p68_p7 = scmp.lt.s32.totalorder %s62_s13, %s62_s13 }
  0x12   :  { %p69_p8 = por %p68_p7, %p67_p6 }
  0x14   :  { %p70_p9 = pnand %p69_p8, %p63_p5 }
  0x16   :  { %73 = shalt.err (!%p70_p9)
}
  0x17   :  { %34 = dma.vmem_to_hbm [thread:$0]  %s32_s12, 256, %s105_s1, [#allocation4]  }
  0x18   :  { %84 = dma.done.wait [#allocation4], 256  }
  0x19   :  { %85 = vsyncadd [#allocation4], 4294967040 }
  0x1a   :  { %38 = vsyncpa [#allocation3], 1 }
  0x1b   :  { %39 = vsyncpa [#allocation4], 1 }

</bundles_post_ra>
